<compile_context>
chip_gen: v6e
topology: v6e:2x2x1
jax: 0.10.0
libtpu: 0.0.40
codegen_flags: <defaults>
</compile_context>

<pallas_src>
import math
import jax
import jax.numpy as jnp
from jax import lax
from jax.experimental import pallas as pl
from jax.experimental.pallas import tpu as pltpu


# ----------------------------- Pallas kernels ------------------------------

def conv1_pool_kernel(p_ref, w_ref, b_ref, o_ref):
    """Fused conv1 (im2col matmul) + bias + ReLU + 2x2/stride-2 max-pool.

    p_ref: (4, 25, B*196)  patches grouped by pool sub-position; features on sublanes,
                           batch*pooled-spatial on lanes.
    w_ref: (6, 25), b_ref: (6, 1), o_ref: (6, B*196)
    """
    acc = jnp.dot(w_ref[...], p_ref[0], preferred_element_type=jnp.float32)
    for k in range(1, p_ref.shape[0]):
        acc = jnp.maximum(acc, jnp.dot(w_ref[...], p_ref[k],
                                       preferred_element_type=jnp.float32))
    # max_k(relu(conv_k + bias)) == relu(max_k(conv_k) + bias)
    o_ref[...] = jnp.maximum(acc + b_ref[...], 0.0)


def conv2_pool_mlp_kernel(p_ref, w2_ref, b2_ref, fw1_ref, fb1_ref,
                          fw2_ref, fb2_ref, fw3_ref, fb3_ref, o_ref):
    """Fused conv2 + bias + ReLU + 2x2 max-pool + fc1 -> relu -> fc2 -> relu -> fc3.

    p_ref:  (4, B, 54, 36) conv2 patches grouped by pool sub-position (features on
                           sublanes, pooled 6x6 spatial on lanes).
    w2_ref: (16, 54), b2_ref: (16, 1)
    fw1_ref:(16, 36, 120)  fc1 weight pre-reshaped so the PyTorch (C,H,W) flatten is a
                           per-output-channel block sum (no in-kernel reshape needed).
    fb1_ref:(1, 120), fw2_ref:(120, 84), fb2_ref:(1, 84), fw3_ref:(84, 10), fb3_ref:(1, 10)
    o_ref:  (B, 1, 10)
    """
    n_groups = p_ref.shape[0]
    batch = p_ref.shape[1]
    n_c2 = w2_ref.shape[0]
    for b in range(batch):
        # conv2 + pool2 in (channels-on-sublanes, spatial-on-lanes) layout.
        z = jnp.dot(w2_ref[...], p_ref[0, b], preferred_element_type=jnp.float32)
        for k in range(1, n_groups):
            z = jnp.maximum(z, jnp.dot(w2_ref[...], p_ref[k, b],
                                       preferred_element_type=jnp.float32))
        z = jnp.maximum(z + b2_ref[...], 0.0)                 # (16, 36)

        # fc1: contraction over (channel, spatial) decomposed per conv2 channel so the
        # flatten needs no in-kernel reshape/transpose.
        h = fb1_ref[...]                                      # (1, 120)
        for c in range(n_c2):
            h = h + jnp.dot(z[c:c + 1, :], fw1_ref[c],
                            preferred_element_type=jnp.float32)
        h = jnp.maximum(h, 0.0)

        h = jnp.maximum(jnp.dot(h, fw2_ref[...],
                                preferred_element_type=jnp.float32) + fb2_ref[...], 0.0)
        o_ref[b] = jnp.dot(h, fw3_ref[...],
                           preferred_element_type=jnp.float32) + fb3_ref[...]


# ------------------------------ Pallas wrappers -----------------------------

def conv1_pool(p1, w1m, b1col):
    """p1: (4, 25, N), w1m: (6, 25), b1col: (6, 1) -> (6, N)."""
    G, K, N = p1.shape
    C = w1m.shape[0]
    return pl.pallas_call(
        conv1_pool_kernel,
        out_shape=jax.ShapeDtypeStruct((C, N), jnp.float32),
        grid=(1,),
        in_specs=[
            pl.BlockSpec((G, K, N), lambda i: (0, 0, 0)),
            pl.BlockSpec((C, K), lambda i: (0, 0)),
            pl.BlockSpec((C, 1), lambda i: (0, 0)),
        ],
        out_specs=pl.BlockSpec((C, N), lambda i: (0, 0)),
    )(p1, w1m, b1col)


def conv2_pool_mlp(p2, w2m, b2col, fw1r, fb1, fw2, fb2, fw3, fb3):
    """p2: (4, B, 54, 36) -> logits (B, 1, 10)."""
    G, B, K, S = p2.shape
    n_out = fw3.shape[1]
    return pl.pallas_call(
        conv2_pool_mlp_kernel,
        out_shape=jax.ShapeDtypeStruct((B, 1, n_out), jnp.float32),
        grid=(1,),
        in_specs=[
            pl.BlockSpec((G, B, K, S), lambda i: (0, 0, 0, 0)),
            pl.BlockSpec(w2m.shape, lambda i: (0, 0)),
            pl.BlockSpec(b2col.shape, lambda i: (0, 0)),
            pl.BlockSpec(fw1r.shape, lambda i: (0, 0, 0)),
            pl.BlockSpec(fb1.shape, lambda i: (0, 0)),
            pl.BlockSpec(fw2.shape, lambda i: (0, 0)),
            pl.BlockSpec(fb2.shape, lambda i: (0, 0)),
            pl.BlockSpec(fw3.shape, lambda i: (0, 0)),
            pl.BlockSpec(fb3.shape, lambda i: (0, 0)),
        ],
        out_specs=pl.BlockSpec((B, 1, n_out), lambda i: (0, 0, 0)),
    )(p2, w2m, b2col, fw1r, fb1, fw2, fb2, fw3, fb3)


# ------------------------------- host-side glue ------------------------------

def lenet_forward(x, params):
    w1, b1, w2, b2, fw1, fb1, fw2, fb2, fw3, fb3 = params
    B = x.shape[0]
    dn = ('NCHW', 'OIHW', 'NCHW')

    # ---- stage 1: conv1 patches, pre-grouped by 2x2 pool sub-position (one fused XLA chain)
    pc1 = lax.conv_general_dilated_patches(x, (5, 5), (1, 1), 'VALID',
                                           dimension_numbers=dn)        # (B, 25, 28, 28)
    pc1 = pc1.reshape(B, 25, 14, 2, 14, 2).transpose(3, 5, 1, 0, 2, 4)  # (2,2,25,B,14,14)
    p1 = pc1.reshape(4, 25, B * 196)                                    # group, K, B*196

    h1 = conv1_pool(p1, w1.reshape(6, 25), b1.reshape(6, 1))            # (6, B*196)

    # ---- stage 2: conv2 patches from the pooled conv1 output, again pre-grouped.
    # TODO(synk): fuse stage 1 and stage 2 into a single pallas_call once an in-kernel
    # strided gather for the conv2 im2col / stride-2 pooling is worth the complexity.
    h1_nchw = h1.reshape(6, B, 14, 14).transpose(1, 0, 2, 3)            # (B, 6, 14, 14)
    cols = [h1_nchw[:, :, ki:ki + 12, kj:kj + 12]
            for ki in range(3) for kj in range(3)]                      # 9 x (B, 6, 12, 12)
    pc2 = jnp.stack(cols, axis=2).reshape(B, 54, 12, 12)                # kappa = c*9+ki*3+kj
    pc2 = pc2.reshape(B, 54, 6, 2, 6, 2).transpose(3, 5, 0, 1, 2, 4)    # (2,2,B,54,6,6)
    p2 = pc2.reshape(4, B, 54, 36)                                      # group, B, K, 36

    out = conv2_pool_mlp(p2, w2.reshape(16, 54), b2.reshape(16, 1),
                         fw1.reshape(16, 36, 120), fb1.reshape(1, -1),
                         fw2, fb2.reshape(1, -1), fw3, fb3.reshape(1, -1))
    return out.reshape(B, 10)


# ------------------------------ params & reference ---------------------------

def init_params(key):
    ks = jax.random.split(key, 10)

    def u(k, shape, fan_in):
        bound = 1.0 / math.sqrt(fan_in)
        return jax.random.uniform(k, shape, jnp.float32, -bound, bound)

    w1 = u(ks[0], (6, 1, 5, 5), 25)
    b1 = u(ks[1], (6,), 25)
    w2 = u(ks[2], (16, 6, 3, 3), 54)
    b2 = u(ks[3], (16,), 54)
    fw1 = u(ks[4], (576, 120), 576)
    fb1 = u(ks[5], (120,), 576)
    fw2 = u(ks[6], (120, 84), 120)
    fb2 = u(ks[7], (84,), 120)
    fw3 = u(ks[8], (84, 10), 84)
    fb3 = u(ks[9], (10,), 84)
    return (w1, b1, w2, b2, fw1, fb1, fw2, fb2, fw3, fb3)


def ref_forward(x, params):
    """Pure-JAX reference matching the PyTorch forward semantics."""
    w1, b1, w2, b2, fw1, fb1, fw2, fb2, fw3, fb3 = params
    dn = ('NCHW', 'OIHW', 'NCHW')
    hi = lax.Precision.HIGHEST
    y = lax.conv_general_dilated(x, w1, (1, 1), 'VALID', dimension_numbers=dn,
                                 precision=hi)
    y = jnp.maximum(y + b1[None, :, None, None], 0.0)
    y = lax.reduce_window(y, -jnp.inf, lax.max, (1, 1, 2, 2), (1, 1, 2, 2), 'VALID')
    y = lax.conv_general_dilated(y, w2, (1, 1), 'VALID', dimension_numbers=dn,
                                 precision=hi)
    y = jnp.maximum(y + b2[None, :, None, None], 0.0)
    y = lax.reduce_window(y, -jnp.inf, lax.max, (1, 1, 2, 2), (1, 1, 2, 2), 'VALID')
    y = y.reshape(y.shape[0], -1)
    y = jnp.maximum(jnp.dot(y, fw1, precision=hi) + fb1, 0.0)
    y = jnp.maximum(jnp.dot(y, fw2, precision=hi) + fb2, 0.0)
    return jnp.dot(y, fw3, precision=hi) + fb3


# ----------------------------------- main ------------------------------------

if __name__ == "__main__":
    key = jax.random.PRNGKey(0)
    pkey, xkey = jax.random.split(key)
    params = init_params(pkey)
    x = jax.random.normal(xkey, (2, 1, 32, 32), jnp.float32)   # NCHW, LeNet needs 32x32

    out = jax.block_until_ready(lenet_forward(x, params))
    ref = jax.block_until_ready(ref_forward(x, params))

    assert out.shape == (2, 10), out.shape
    max_diff = float(jnp.max(jnp.abs(out - ref)))
    assert jnp.allclose(out, ref, atol=1e-2, rtol=1e-2), f"max diff {max_diff}"
    print("KERNEL_OK")
</pallas_src>

<mosaic_0001>
module attributes {stable_mosaic.version = 11 : i64} {
  func.func @conv1_pool_kernel(%arg0: i32, %arg1: memref<4x25x392xf32, #tpu.memory_space<vmem>>, %arg2: memref<6x25xf32, #tpu.memory_space<vmem>>, %arg3: memref<6x1xf32, #tpu.memory_space<vmem>>, %arg4: memref<6x392xf32, #tpu.memory_space<vmem>>) attributes {dimension_semantics = [#tpu.dimension_semantics<arbitrary>], iteration_bounds = array<i64: 1>, scalar_prefetch = 0 : i64, scratch_operands = 0 : i64, tpu.core_type = #tpu.core_type<tc>, window_params = [{pipeline_mode = #tpu.pipeline_mode<synchronous>, transform_indices = @transform_0, window_bounds = array<i64: 4, 25, 392>}, {pipeline_mode = #tpu.pipeline_mode<synchronous>, transform_indices = @transform_1, window_bounds = array<i64: 6, 25>}, {pipeline_mode = #tpu.pipeline_mode<synchronous>, transform_indices = @transform_2, window_bounds = array<i64: 6, 1>}, {pipeline_mode = #tpu.pipeline_mode<synchronous>, transform_indices = @transform_3, window_bounds = array<i64: 6, 392>}]} {
    %c0 = arith.constant 0 : index
    %c0_0 = arith.constant 0 : index
    %0 = vector.load %arg2[%c0, %c0_0] : memref<6x25xf32, #tpu.memory_space<vmem>>, vector<6x25xf32>
    %c0_1 = arith.constant 0 : index
    %c0_2 = arith.constant 0 : index
    %c0_3 = arith.constant 0 : index
    %1 = vector.load %arg1[%c0_1, %c0_2, %c0_3] : memref<4x25x392xf32, #tpu.memory_space<vmem>>, vector<1x25x392xf32>
    %2 = vector.shape_cast %1 : vector<1x25x392xf32> to vector<25x392xf32>
    %cst = arith.constant dense<0.000000e+00> : vector<6x392xf32>
    %3 = tpu.matmul %0, %2, %cst {dimension_numbers = #tpu.dot_dimension_numbers<[1], [0], [0], [1], [0, 0, 1, 1], [], []>} : vector<6x25xf32>, vector<25x392xf32>, vector<6x392xf32> -> vector<6x392xf32>
    %c0_4 = arith.constant 0 : index
    %c0_5 = arith.constant 0 : index
    %4 = vector.load %arg2[%c0_4, %c0_5] : memref<6x25xf32, #tpu.memory_space<vmem>>, vector<6x25xf32>
    %c1 = arith.constant 1 : index
    %c0_6 = arith.constant 0 : index
    %c0_7 = arith.constant 0 : index
    %5 = vector.load %arg1[%c1, %c0_6, %c0_7] : memref<4x25x392xf32, #tpu.memory_space<vmem>>, vector<1x25x392xf32>
    %6 = vector.shape_cast %5 : vector<1x25x392xf32> to vector<25x392xf32>
    %cst_8 = arith.constant dense<0.000000e+00> : vector<6x392xf32>
    %7 = tpu.matmul %4, %6, %cst_8 {dimension_numbers = #tpu.dot_dimension_numbers<[1], [0], [0], [1], [0, 0, 1, 1], [], []>} : vector<6x25xf32>, vector<25x392xf32>, vector<6x392xf32> -> vector<6x392xf32>
    %8 = arith.maximumf %3, %7 : vector<6x392xf32>
    %c0_9 = arith.constant 0 : index
    %c0_10 = arith.constant 0 : index
    %9 = vector.load %arg2[%c0_9, %c0_10] : memref<6x25xf32, #tpu.memory_space<vmem>>, vector<6x25xf32>
    %c2 = arith.constant 2 : index
    %c0_11 = arith.constant 0 : index
    %c0_12 = arith.constant 0 : index
    %10 = vector.load %arg1[%c2, %c0_11, %c0_12] : memref<4x25x392xf32, #tpu.memory_space<vmem>>, vector<1x25x392xf32>
    %11 = vector.shape_cast %10 : vector<1x25x392xf32> to vector<25x392xf32>
    %cst_13 = arith.constant dense<0.000000e+00> : vector<6x392xf32>
    %12 = tpu.matmul %9, %11, %cst_13 {dimension_numbers = #tpu.dot_dimension_numbers<[1], [0], [0], [1], [0, 0, 1, 1], [], []>} : vector<6x25xf32>, vector<25x392xf32>, vector<6x392xf32> -> vector<6x392xf32>
    %13 = arith.maximumf %8, %12 : vector<6x392xf32>
    %c0_14 = arith.constant 0 : index
    %c0_15 = arith.constant 0 : index
    %14 = vector.load %arg2[%c0_14, %c0_15] : memref<6x25xf32, #tpu.memory_space<vmem>>, vector<6x25xf32>
    %c3 = arith.constant 3 : index
    %c0_16 = arith.constant 0 : index
    %c0_17 = arith.constant 0 : index
    %15 = vector.load %arg1[%c3, %c0_16, %c0_17] : memref<4x25x392xf32, #tpu.memory_space<vmem>>, vector<1x25x392xf32>
    %16 = vector.shape_cast %15 : vector<1x25x392xf32> to vector<25x392xf32>
    %cst_18 = arith.constant dense<0.000000e+00> : vector<6x392xf32>
    %17 = tpu.matmul %14, %16, %cst_18 {dimension_numbers = #tpu.dot_dimension_numbers<[1], [0], [0], [1], [0, 0, 1, 1], [], []>} : vector<6x25xf32>, vector<25x392xf32>, vector<6x392xf32> -> vector<6x392xf32>
    %18 = arith.maximumf %13, %17 : vector<6x392xf32>
    %c0_19 = arith.constant 0 : index
    %c0_20 = arith.constant 0 : index
    %19 = vector.load %arg3[%c0_19, %c0_20] : memref<6x1xf32, #tpu.memory_space<vmem>>, vector<6x1xf32>
    %20 = vector.broadcast %19 : vector<6x1xf32> to vector<6x392xf32>
    %21 = arith.addf %18, %20 : vector<6x392xf32>
    %cst_21 = arith.constant 0.000000e+00 : f32
    %22 = vector.broadcast %cst_21 : f32 to vector<6x392xf32>
    %23 = arith.maximumf %21, %22 : vector<6x392xf32>
    %c0_22 = arith.constant 0 : index
    %c0_23 = arith.constant 0 : index
    %24 = vector.load %arg4[%c0_22, %c0_23] : memref<6x392xf32, #tpu.memory_space<vmem>>, vector<6x392xf32>
    tpu.vector_store %arg4[%c0_22, %c0_23], %23 {strides = array<i32>} : memref<6x392xf32, #tpu.memory_space<vmem>>, vector<6x392xf32>,
    return
  }
  func.func @transform_0(%arg0: i32) -> (i32, i32, i32) {
    %c0_i32 = arith.constant 0 : i32
    %c0_i32_0 = arith.constant 0 : i32
    %c0_i32_1 = arith.constant 0 : i32
    %c0_i32_2 = arith.constant 0 : i32
    return %c0_i32, %c0_i32_0, %c0_i32_1 : i32, i32, i32
  }
  func.func @transform_1(%arg0: i32) -> (i32, i32) {
    %c0_i32 = arith.constant 0 : i32
    %c0_i32_0 = arith.constant 0 : i32
    %c0_i32_1 = arith.constant 0 : i32
    return %c0_i32, %c0_i32_0 : i32, i32
  }
  func.func @transform_2(%arg0: i32) -> (i32, i32) {
    %c0_i32 = arith.constant 0 : i32
    %c0_i32_0 = arith.constant 0 : i32
    %c0_i32_1 = arith.constant 0 : i32
    return %c0_i32, %c0_i32_0 : i32, i32
  }
  func.func @transform_3(%arg0: i32) -> (i32, i32) {
    %c0_i32 = arith.constant 0 : i32
    %c0_i32_0 = arith.constant 0 : i32
    %c0_i32_1 = arith.constant 0 : i32
    return %c0_i32, %c0_i32_0 : i32, i32
  }
}

</mosaic_0001>

<bundles_post_ra>
// kernel: tpu_custom_call.1
= control target key start
LH: loop header
LB: loop body
LE: loop exit
PB: predicated region body
PF: predicated region fallthrough
CT: control target
= control target key end

     0   :  { %vm36_vm0 = vcmask 1040384   ;;  %vm32_vm1 = vcmask 203776   ;;  %v847_v17 = vmov 0.0   ;;  %s1113_s0 = inlined_call_operand.vmem [shape: f32[4,25,392], index: 0, kind: input, shape index: {}]   ;;  %s1114_s1 = inlined_call_operand.vmem [shape: f32[6,25], index: 1, kind: input, shape index: {}]   ;;  %s1115_s2 = inlined_call_operand.vmem [shape: f32[6,1], index: 2, kind: input, shape index: {}]   ;;  %s1116_s3 = inlined_call_operand.hbm [shape: f32[6,392], index: 3, kind: output, shape index: {}]  }
   0x1   :  { %v29_v0 = vld [vmem:[%s1113_s0 + $0x68] sm:$0x1]  ;;  %v31_v1 = vld [vmem:[%s1113_s0 + $0x78] sm:$0x1]  ;;  %v28_v3 = vld [vmem:[%s1113_s0 + $0x60] sm:$0x1]  ;;  %113 = vmatprep.mubr.f32.mxu0 %v847_v17  ;;  %184 = vmatprep.mubr.f32.mxu1 %v847_v17 }
   0x2   :  { %v25_v2 = vld [vmem:[%s1113_s0 + $0x48] sm:$0xff]  ;;  %749 = vmatprep.subr.msk.mxu0 %vm36_vm0, %v29_v0  ;;  %752 = vmatprep.subr.msk.mxu1 %vm36_vm0, %v31_v1  ;;  %v30_v4 = vld [vmem:[%s1113_s0 + $0x70] sm:$0x1]  ;;  %v27_v5 = vld [vmem:[%s1113_s0 + $0x58] sm:$0xff] }
   0x3   :  { %750 = vmatpush1.msk.msra.mxu0 %vm36_vm0, %v28_v3  ;;  %753 = vmatpush1.msk.msra.mxu1 %vm36_vm0, %v30_v4  ;;  %v24_v6 = vld [vmem:[%s1113_s0 + $0x40] sm:$0xff]  ;;  %v26_v7 = vld [vmem:[%s1113_s0 + $0x50] sm:$0xff]  ;;  %v21_v8 = vld [vmem:[%s1113_s0 + $0x28] sm:$0xff] }
   0x4   :  { %75 = vmatprep.subr.mxu0 %v25_v2  ;;  %146 = vmatprep.subr.mxu1 %v27_v5  ;;  %v23_v9 = vld [vmem:[%s1113_s0 + $0x38] sm:$0xff]  ;;  %v20_v10 = vld [vmem:[%s1113_s0 + $0x20] sm:$0xff]  ;;  %v22_v11 = vld [vmem:[%s1113_s0 + $0x30] sm:$0xff] }
   0x5   :  { %76 = vmatpush1.msra.mxu0 %v24_v6  ;;  %147 = vmatpush1.msra.mxu1 %v26_v7  ;;  %v17_v12 = vld [vmem:[%s1113_s0 + $0x8] sm:$0xff]  ;;  %v19_v13 = vld [vmem:[%s1113_s0 + $0x18] sm:$0xff]  ;;  %v16_v14 = vld [vmem:[%s1113_s0] sm:$0xff] }
   0x6   :  { %77 = vmatprep.subr.mxu0 %v21_v8  ;;  %148 = vmatprep.subr.mxu1 %v23_v9  ;;  %v18_v15 = vld [vmem:[%s1113_s0 + $0x10] sm:$0xff]  ;;  %v925_v16 = vld [vmem:[%s1114_s1] sm:$0x3f]  ;;  %v768_v18 = vld [vmem:[%s1113_s0 + $0xe8] sm:$0x1] }
   0x7   :  { %78 = vmatpush1.msra.mxu0 %v20_v10  ;;  %149 = vmatpush1.msra.mxu1 %v22_v11  ;;  %v770_v19 = vld [vmem:[%s1113_s0 + $0xf8] sm:$0x1]  ;;  %v767_v20 = vld [vmem:[%s1113_s0 + $0xe0] sm:$0x1]  ;;  %v769_v21 = vld [vmem:[%s1113_s0 + $0xf0] sm:$0x1] }
   0x8   :  { %79 = vmatprep.subr.mxu0 %v17_v12  ;;  %150 = vmatprep.subr.mxu1 %v19_v13  ;;  %v764_v22 = vld [vmem:[%s1113_s0 + $0xc8] sm:$0xff]  ;;  %v766_v23 = vld [vmem:[%s1113_s0 + $0xd8] sm:$0xff]  ;;  %v763_v24 = vld [vmem:[%s1113_s0 + $0xc0] sm:$0xff] }
   0x9   :  { %80 = vmatpush1.msra.mxu0 %v16_v14  ;;  %151 = vmatpush1.msra.mxu1 %v18_v15  ;;  %v765_v25 = vld [vmem:[%s1113_s0 + $0xd0] sm:$0xff]  ;;  %v760_v26 = vld [vmem:[%s1113_s0 + $0xa8] sm:$0xff]  ;;  %v762_v27 = vld [vmem:[%s1113_s0 + $0xb8] sm:$0xff] }
   0xa   :  { %751 = vmatmul.mubr.msk.f32.vlgmr.msra.gmra.mxu0 %vm32_vm1, %v925_v16  ;;  %754 = vmatmul.mubr.msk.f32.vlgmr.msra.gmra.mxu1 %vm32_vm1, %v925_v16  ;;  %v759_v28 = vld [vmem:[%s1113_s0 + $0xa0] sm:$0xff]  ;;  %v761_v29 = vld [vmem:[%s1113_s0 + $0xb0] sm:$0xff]  ;;  %v756_v30 = vld [vmem:[%s1113_s0 + $0x88] sm:$0xff] }
   0xb   :  { %771 = vmatprep.subr.msk.mxu0 %vm36_vm0, %v768_v18  ;;  %774 = vmatprep.subr.msk.mxu1 %vm36_vm0, %v770_v19  ;;  %v758_v31 = vld [vmem:[%s1113_s0 + $0x98] sm:$0xff]  ;;  %v755_v32 = vld [vmem:[%s1113_s0 + $0x80] sm:$0xff]  ;;  %v757_v33 = vld [vmem:[%s1113_s0 + $0x90] sm:$0xff] }
   0xc   :  { %772 = vmatpush1.msk.msra.mxu0 %vm36_vm0, %v767_v20  ;;  %775 = vmatpush1.msk.msra.mxu1 %vm36_vm0, %v769_v21  ;;  %v790_v34 = vld [vmem:[%s1113_s0 + $0x168] sm:$0x1]  ;;  %v792_v35 = vld [vmem:[%s1113_s0 + $0x178] sm:$0x1]  ;;  %v789_v36 = vld [vmem:[%s1113_s0 + $0x160] sm:$0x1] }
   0xd   :  { %246 = vmatprep.subr.mxu0 %v764_v22  ;;  %317 = vmatprep.subr.mxu1 %v766_v23  ;;  %v791_v37 = vld [vmem:[%s1113_s0 + $0x170] sm:$0x1]  ;;  %v786_v38 = vld [vmem:[%s1113_s0 + $0x148] sm:$0xff]  ;;  %v788_v39 = vld [vmem:[%s1113_s0 + $0x158] sm:$0xff] }
   0xe   :  { %247 = vmatpush1.msra.mxu0 %v763_v24  ;;  %318 = vmatpush1.msra.mxu1 %v765_v25  ;;  %v785_v40 = vld [vmem:[%s1113_s0 + $0x140] sm:$0xff]  ;;  %v787_v41 = vld [vmem:[%s1113_s0 + $0x150] sm:$0xff]  ;;  %v782_v42 = vld [vmem:[%s1113_s0 + $0x128] sm:$0xff] }
   0xf   :  { %248 = vmatprep.subr.mxu0 %v760_v26  ;;  %319 = vmatprep.subr.mxu1 %v762_v27  ;;  %v784_v43 = vld [vmem:[%s1113_s0 + $0x138] sm:$0xff] }
  0x10   :  { %249 = vmatpush1.msra.mxu0 %v759_v28  ;;  %320 = vmatpush1.msra.mxu1 %v761_v29 }
  0x11   :  { %250 = vmatprep.subr.mxu0 %v756_v30  ;;  %321 = vmatprep.subr.mxu1 %v758_v31 }
  0x12   :  { %251 = vmatpush1.msra.mxu0 %v755_v32  ;;  %284 = vmatprep.mubr.f32.mxu0 %v847_v17 }
  0x13   :  { %322 = vmatpush1.msra.mxu1 %v757_v33  ;;  %355 = vmatprep.mubr.f32.mxu1 %v847_v17 }
  0x14   :  { %773 = vmatmul.mubr.msk.f32.vlgmr.msra.gmra.mxu0 %vm32_vm1, %v925_v16  ;;  %776 = vmatmul.mubr.msk.f32.vlgmr.msra.gmra.mxu1 %vm32_vm1, %v925_v16 }
  0x15   :  { %793 = vmatprep.subr.msk.mxu0 %vm36_vm0, %v790_v34  ;;  %796 = vmatprep.subr.msk.mxu1 %vm36_vm0, %v792_v35 }
  0x16   :  { %794 = vmatpush1.msk.msra.mxu0 %vm36_vm0, %v789_v36  ;;  %797 = vmatpush1.msk.msra.mxu1 %vm36_vm0, %v791_v37 }
  0x17   :  { %8 = vsyncpa [#allocation3], 0  ;;  %421 = vmatprep.subr.mxu0 %v786_v38  ;;  %492 = vmatprep.subr.mxu1 %v788_v39  ;;  %v781_v44 = vld [vmem:[%s1113_s0 + $0x120] sm:$0xff]  ;;  %v783_v45 = vld [vmem:[%s1113_s0 + $0x130] sm:$0xff]  ;;  %v848_v3 = vmov 0   ;;  %vm733_vm2 = vcmask 62464  }
  0x18   :  { %422 = vmatpush1.msra.mxu0 %v785_v40  ;;  %493 = vmatpush1.msra.mxu1 %v787_v41  ;;  %v778_v46 = vld [vmem:[%s1113_s0 + $0x108] sm:$0xff]  ;;  %v780_v47 = vld [vmem:[%s1113_s0 + $0x118] sm:$0xff]  ;;  %v777_v48 = vld [vmem:[%s1113_s0 + $0x100] sm:$0xff] }
  0x19   :  { %423 = vmatprep.subr.mxu0 %v782_v42  ;;  %494 = vmatprep.subr.mxu1 %v784_v43  ;;  %v779_v49 = vld [vmem:[%s1113_s0 + $0x110] sm:$0xff]  ;;  %v812_v50 = vld [vmem:[%s1113_s0 + $0x1e8] sm:$0x1]  ;;  %v814_v51 = vld [vmem:[%s1113_s0 + $0x1f8] sm:$0x1] }
  0x1a   :  { %424 = vmatpush1.msra.mxu0 %v781_v44  ;;  %495 = vmatpush1.msra.mxu1 %v783_v45  ;;  %v811_v52 = vld [vmem:[%s1113_s0 + $0x1e0] sm:$0x1]  ;;  %v813_v53 = vld [vmem:[%s1113_s0 + $0x1f0] sm:$0x1]  ;;  %v808_v54 = vld [vmem:[%s1113_s0 + $0x1c8] sm:$0xff] }
  0x1b   :  { %425 = vmatprep.subr.mxu0 %v778_v46  ;;  %496 = vmatprep.subr.mxu1 %v780_v47  ;;  %v810_v55 = vld [vmem:[%s1113_s0 + $0x1d8] sm:$0xff]  ;;  %v807_v56 = vld [vmem:[%s1113_s0 + $0x1c0] sm:$0xff]  ;;  %v809_v57 = vld [vmem:[%s1113_s0 + $0x1d0] sm:$0xff] }
  0x1c   :  { %426 = vmatpush1.msra.mxu0 %v777_v48  ;;  %459 = vmatprep.mubr.f32.mxu0 %v847_v17  ;;  %v804_v58 = vld [vmem:[%s1113_s0 + $0x1a8] sm:$0xff]  ;;  %v806_v59 = vld [vmem:[%s1113_s0 + $0x1b8] sm:$0xff]  ;;  %v803_v60 = vld [vmem:[%s1113_s0 + $0x1a0] sm:$0xff] }
  0x1d   :  { %497 = vmatpush1.msra.mxu1 %v779_v49  ;;  %530 = vmatprep.mubr.f32.mxu1 %v847_v17  ;;  %v805_v61 = vld [vmem:[%s1113_s0 + $0x1b0] sm:$0xff]  ;;  %v800_v62 = vld [vmem:[%s1113_s0 + $0x188] sm:$0xff]  ;;  %v802_v63 = vld [vmem:[%s1113_s0 + $0x198] sm:$0xff] }
  0x1e   :  { %795 = vmatmul.mubr.msk.f32.vlgmr.msra.gmra.mxu0 %vm32_vm1, %v925_v16  ;;  %798 = vmatmul.mubr.msk.f32.vlgmr.msra.gmra.mxu1 %vm32_vm1, %v925_v16  ;;  %v799_v0 = vld [vmem:[%s1113_s0 + $0x180] sm:$0xff]  ;;  %v801_v1 = vld [vmem:[%s1113_s0 + $0x190] sm:$0xff]  ;;  %s849_s0 = smov [#allocation2]  }
  0x1f   :  { %815 = vmatprep.subr.msk.mxu0 %vm36_vm0, %v812_v50  ;;  %818 = vmatprep.subr.msk.mxu1 %vm36_vm0, %v814_v51  ;;  %v716_v2 = vld [vmem:[%s1115_s2] sm:$0x3f]  ;;  %s741_s2 = sshll.u32 %s849_s0, 4  ;;  %s742_s2 = int_to_ptr.vmem [resolvable:$true] %s741_s2 }
  0x20   :  { %816 = vmatpush1.msk.msra.mxu0 %vm36_vm0, %v811_v52  ;;  %819 = vmatpush1.msk.msra.mxu1 %vm36_vm0, %v813_v53  ;;  %s825_s5 = scalar_lea.vmem %s742_s2, 512  ;;  %p830_p1 = scmp.lt.s32.totalorder %s742_s2, %s742_s2 }
  0x21   :  { %596 = vmatprep.subr.mxu0 %v808_v54  ;;  %667 = vmatprep.subr.mxu1 %v810_v55  ;;  %p826_p0 = scmp.ne.s32.totalorder %s742_s2, %s825_s5  ;;  %p831_p2 = scmp.lt.s32.totalorder %s825_s5, %s825_s5 }
  0x22   :  { %597 = vmatpush1.msra.mxu0 %v807_v56  ;;  %668 = vmatpush1.msra.mxu1 %v809_v57 }
  0x23   :  { %598 = vmatprep.subr.mxu0 %v804_v58  ;;  %669 = vmatprep.subr.mxu1 %v806_v59  ;;  %p832_p3 = por %p831_p2, %p830_p1 }
  0x24   :  { %599 = vmatpush1.msra.mxu0 %v803_v60  ;;  %670 = vmatpush1.msra.mxu1 %v805_v61 }
  0x25   :  { %600 = vmatprep.subr.mxu0 %v800_v62  ;;  %671 = vmatprep.subr.mxu1 %v802_v63  ;;  %p833_p4 = pnand %p832_p3, %p826_p0 }
  0x26   :  { %601 = vmatpush1.msra.mxu0 %v799_v0  ;;  %634 = vmatprep.mubr.f32.mxu0 %v847_v17 }
  0x27   :  { %672 = vmatpush1.msra.mxu1 %v801_v1  ;;  %705 = vmatprep.mubr.f32.mxu1 %v847_v17 }
  0x28   :  { %817 = vmatmul.mubr.msk.f32.vlgmr.msra.gmra.mxu0 %vm32_vm1, %v925_v16  ;;  %820 = vmatmul.mubr.msk.f32.vlgmr.msra.gmra.mxu1 %vm32_vm1, %v925_v16 }
  0x29   :  { %824 = vset.pattern.permute.xlu0 %v848_v3 }
  0x2a   :  { %719 = vperm.xlu0 %824, %v716_v2  }
  0xa5   :  { %v720_v22 = vpop.permute.xlu0 %719 }
  0xca   :  { %v115_v4 = vpop.f32.mrf.mxu0  ;;  %v186_v5 = vpop.f32.mrf.mxu1 }
  0xcc   :  { %v117_v6 = vpop.f32.mrf.mxu0  ;;  %v188_v7 = vpop.f32.mrf.mxu1 }
  0xd4   :  { %v286_v8 = vpop.f32.mrf.mxu0  ;;  %v357_v9 = vpop.f32.mrf.mxu1 }
  0xd5   :  { %v362_v14 = vmax.f32 %v115_v4, %v286_v8  ;;  %v364_v15 = vmax.f32 %v186_v5, %v357_v9 }
  0xd6   :  { %v288_v10 = vpop.f32.mrf.mxu0  ;;  %v359_v11 = vpop.f32.mrf.mxu1 }
  0xd7   :  { %v363_v19 = vmax.f32 %v117_v6, %v288_v10  ;;  %v365_v20 = vmax.f32 %v188_v7, %v359_v11 }
  0xde   :  { %v461_v12 = vpop.f32.mrf.mxu0  ;;  %v532_v13 = vpop.f32.mrf.mxu1 }
  0xdf   :  { %v537_v16 = vmax.f32 %v362_v14, %v461_v12  ;;  %v539_v21 = vmax.f32 %v364_v15, %v532_v13 }
  0xe0   :  { %v463_v17 = vpop.f32.mrf.mxu0  ;;  %v534_v18 = vpop.f32.mrf.mxu1 }
  0xe1   :  { %v538_v25 = vmax.f32 %v363_v19, %v463_v17  ;;  %v540_v26 = vmax.f32 %v365_v20, %v534_v18 }
  0xe8   :  { %v636_v23 = vpop.f32.mrf.mxu0  ;;  %v707_v24 = vpop.f32.mrf.mxu1 }
  0xe9   :  { %v712_v27 = vmax.f32 %v537_v16, %v636_v23  ;;  %v714_v28 = vmax.f32 %v539_v21, %v707_v24 }
  0xea   :  { %v638_v29 = vpop.f32.mrf.mxu0  ;;  %v709_v30 = vpop.f32.mrf.mxu1 }
  0xeb   :  { %v722_v31 = vadd.f32 %v720_v22, %v712_v27  ;;  %v724_v32 = vadd.f32 %v720_v22, %v714_v28  ;;  %v713_v33 = vmax.f32 %v538_v25, %v638_v29  ;;  %v715_v34 = vmax.f32 %v540_v26, %v709_v30 }
  0xed   :  { %v726_v35 = vmax.f32 %v722_v31, 0.0  ;;  %v728_v36 = vmax.f32 %v724_v32, 0.0  ;;  %v723_v37 = vadd.f32 %v720_v22, %v713_v33  ;;  %v725_v38 = vadd.f32 %v720_v22, %v715_v34 }
  0xef   :  { %730 = vst [vmem:[#allocation2] sm:$0x3f] %v726_v35  ;;  %732 = vst [vmem:[#allocation2 + $0x10] sm:$0x3f] %v728_v36  ;;  %v727_v39 = vmax.f32 %v723_v37, 0.0  ;;  %v729_v40 = vmax.f32 %v725_v38, 0.0 }
  0xf1   :  { %731 = vst [vmem:[#allocation2 + $0x8] sm:$0x3f] %v727_v39  ;;  %734 = vst.msk [vmem:[#allocation2 + $0x18] sm:$0x3f] %vm733_vm2, %v729_v40 }
  0xf2   :  { %836 = shalt.err (!%p833_p4)
}
  0xf3   :  { %744 = dma.vmem_to_hbm [thread:$0]  %s742_s2, 512, %s1116_s3, [#allocation3]  }
  0xf4   :  { %845 = dma.done.wait [#allocation3], 512  }
  0xf5   :  { %846 = vsyncadd [#allocation3], 4294966784 }
  0xf6   :  { %748 = vsyncpa [#allocation3], 1 }

</bundles_post_ra>
